<compile_context>
chip_gen: v7x
topology: tpu7x:2x2x1
jax: 0.10.0
libtpu: 0.0.40
codegen_flags: <defaults>
</compile_context>

<pallas_src>
import functools

import jax
import jax.numpy as jnp
from jax.experimental import pallas as pl
from jax.experimental.pallas import tpu as pltpu


def _round_up(x, m):
    return ((x + m - 1) // m) * m


def critic_mlp_kernel(x_ref, w1_ref, b1_ref, w2_ref, b2_ref, w3_ref, b3_ref, o_ref):
    # In-kernel bf16 cast of the f32 state tile (hidden under the DMA).
    x = x_ref[...].astype(jnp.bfloat16)

    # Layer 1: (TILE_B, D)bf16 @ (D, H1)bf16 -> f32 acc, bias + ReLU in f32.
    h1 = jnp.dot(x, w1_ref[...], preferred_element_type=jnp.float32)
    h1 = jnp.maximum(h1 + b1_ref[...], 0.0)

    # Layer 2: (TILE_B, H1)bf16 @ (H1, H2)bf16 -> f32 acc, bias + ReLU in f32.
    h2 = jnp.dot(h1.astype(jnp.bfloat16), w2_ref[...],
                 preferred_element_type=jnp.float32)
    h2 = jnp.maximum(h2 + b2_ref[...], 0.0)

    # Value head (out_features = 1): VPU multiply + XLU row reduction instead of a
    # degenerate N=1 MXU matmul.  w3_ref is the (1, H2) weight row in f32.
    v = jnp.sum(h2 * w3_ref[...], axis=-1, keepdims=True) + b3_ref[0, 0]

    # Narrow (TILE_B, 1) store: tiny masked writeback (4 B/row).
    o_ref[...] = v


@functools.partial(jax.jit, static_argnames=("tile_b_max",))
def critic_forward(state, params, *, tile_b_max=512):
    """state: (B, state_dim) f32.  params: (in,out) weights + (1,out)/(1,1) biases."""
    w1 = params["w1"].astype(jnp.bfloat16)                     # (D,  H1)
    w2 = params["w2"].astype(jnp.bfloat16)                     # (H1, H2)
    b1 = params["b1"].astype(jnp.float32).reshape(1, -1)       # (1,  H1)
    b2 = params["b2"].astype(jnp.float32).reshape(1, -1)       # (1,  H2)
    w3 = params["w3"].astype(jnp.float32).reshape(1, -1)       # (1,  H2)  value-head row
    b3 = params["b3"].astype(jnp.float32).reshape(1, 1)        # (1,  1)   scalar in SMEM

    state = state.astype(jnp.float32)
    B, D = state.shape
    H1 = w1.shape[1]
    H2 = w2.shape[1]

    # Batch tile: multiple of 16 (native bf16 sublane packing), capped at tile_b_max.
    tile_b = min(tile_b_max, _round_up(B, 16))
    # Megacore (v7x): ensure the "parallel" batch axis has >= 2 grid steps for large
    # batches so both TensorCores get work.
    if B >= 256 and pl.cdiv(B, tile_b) < 2:
        tile_b = max(128, _round_up(pl.cdiv(B, 2), 128))

    grid = (pl.cdiv(B, tile_b),)

    cost = pl.CostEstimate(
        flops=2 * B * (D * H1 + H1 * H2 + H2),
        transcendentals=0,
        bytes_accessed=(state.size * 4                      # f32 state read
                        + w1.size * 2 + w2.size * 2         # bf16 weights
                        + (b1.size + b2.size + w3.size + b3.size) * 4
                        + B * 4),                           # (B, 1) f32 output
    )

    out = pl.pallas_call(
        critic_mlp_kernel,
        out_shape=jax.ShapeDtypeStruct((B, 1), jnp.float32),
        grid=grid,
        in_specs=[
            pl.BlockSpec((tile_b, D), lambda i: (i, 0)),            # state tile (f32)
            pl.BlockSpec((D, H1), lambda i: (0, 0)),                # w1 (VMEM-resident)
            pl.BlockSpec((1, H1), lambda i: (0, 0)),                # b1
            pl.BlockSpec((H1, H2), lambda i: (0, 0)),               # w2 (VMEM-resident)
            pl.BlockSpec((1, H2), lambda i: (0, 0)),                # b2
            pl.BlockSpec((1, H2), lambda i: (0, 0)),                # w3 row
            pl.BlockSpec(memory_space=pltpu.MemorySpace.SMEM),      # b3 scalar
        ],
        out_specs=pl.BlockSpec((tile_b, 1), lambda i: (i, 0)),
        compiler_params=pltpu.CompilerParams(
            dimension_semantics=("parallel",),
        ),
        cost_estimate=cost,
    )(state, w1, b1, w2, b2, w3, b3)

    return out


def init_params(key, state_dim, h1=256, h2=256):
    """Deterministic synthetic init (shapes match the torch module, stored as (in,out))."""
    k1, k2, k3 = jax.random.split(key, 3)
    s = lambda fan_in: 1.0 / jnp.sqrt(jnp.float32(fan_in))
    return {
        "w1": jax.random.uniform(k1, (state_dim, h1), jnp.float32, -s(state_dim), s(state_dim)),
        "b1": jnp.zeros((1, h1), jnp.float32),
        "w2": jax.random.uniform(k2, (h1, h2), jnp.float32, -s(h1), s(h1)),
        "b2": jnp.zeros((1, h2), jnp.float32),
        "w3": jax.random.uniform(k3, (h2, 1), jnp.float32, -s(h2), s(h2)),
        "b3": jnp.zeros((1, 1), jnp.float32),
    }


if __name__ == "__main__":
    key = jax.random.PRNGKey(0)
    k_param, k_state = jax.random.split(key)

    B, STATE_DIM, H1, H2 = 8, 8, 256, 256
    params = init_params(k_param, STATE_DIM, H1, H2)
    state = jax.random.normal(k_state, (B, STATE_DIM), jnp.float32)

    # Pure-JAX f32 reference (same math as the torch module's forward).
    def ref(x, p):
        h = jnp.maximum(x @ p["w1"] + p["b1"], 0.0)
        h = jnp.maximum(h @ p["w2"] + p["b2"], 0.0)
        return h @ p["w3"] + p["b3"]

    out = critic_forward(state, params)
    out = jax.block_until_ready(out)
    expected = ref(state, params)
    assert out.shape == (B, 1), out.shape
    # bf16 MXU inputs with f32 accumulation -> loosened tolerance vs f32 reference.
    assert jnp.allclose(out, expected, atol=5e-2, rtol=5e-2), "mismatch vs reference"

    # Second check: multi-step grid with a partial last tile (exercises masked edge tile).
    B2 = 200
    state2 = jax.random.normal(jax.random.PRNGKey(1), (B2, STATE_DIM), jnp.float32)
    out2 = jax.block_until_ready(critic_forward(state2, params, tile_b_max=64))
    expected2 = ref(state2, params)
    assert out2.shape == (B2, 1), out2.shape
    assert jnp.allclose(out2, expected2, atol=5e-2, rtol=5e-2), "mismatch vs reference (B2)"

    print("KERNEL_OK")
</pallas_src>

<mosaic_0001>
module attributes {stable_mosaic.version = 11 : i64} {
  func.func @critic_mlp_kernel(%arg0: i32, %arg1: memref<16x8xf32, #tpu.memory_space<vmem>>, %arg2: memref<8x256xbf16, #tpu.memory_space<vmem>>, %arg3: memref<1x256xf32, #tpu.memory_space<vmem>>, %arg4: memref<256x256xbf16, #tpu.memory_space<vmem>>, %arg5: memref<1x256xf32, #tpu.memory_space<vmem>>, %arg6: memref<1x256xf32, #tpu.memory_space<vmem>>, %arg7: memref<1x1xf32, #tpu.memory_space<smem>>, %arg8: memref<16x1xf32, #tpu.memory_space<vmem>>) attributes {dimension_semantics = [#tpu.dimension_semantics<parallel>], iteration_bounds = array<i64: 1>, scalar_prefetch = 0 : i64, scratch_operands = 0 : i64, tpu.core_type = #tpu.core_type<tc>, window_params = [{transform_indices = @transform_0, window_bounds = array<i64: 16, 8>}, {pipeline_mode = #tpu.pipeline_mode<synchronous>, transform_indices = @transform_1, window_bounds = array<i64: 8, 256>}, {pipeline_mode = #tpu.pipeline_mode<synchronous>, transform_indices = @transform_2, window_bounds = array<i64: 1, 256>}, {pipeline_mode = #tpu.pipeline_mode<synchronous>, transform_indices = @transform_3, window_bounds = array<i64: 256, 256>}, {pipeline_mode = #tpu.pipeline_mode<synchronous>, transform_indices = @transform_4, window_bounds = array<i64: 1, 256>}, {pipeline_mode = #tpu.pipeline_mode<synchronous>, transform_indices = @transform_5, window_bounds = array<i64: 1, 256>}, {transform_indices = @transform_6, window_bounds = array<i64: 1, 1>}, {transform_indices = @transform_7, window_bounds = array<i64: 16, 1>}]} {
    %c0 = arith.constant 0 : index
    %c0_0 = arith.constant 0 : index
    %0 = vector.load %arg1[%c0, %c0_0] : memref<16x8xf32, #tpu.memory_space<vmem>>, vector<16x8xf32>
    %1 = arith.truncf %0 : vector<16x8xf32> to vector<16x8xbf16>
    %c0_1 = arith.constant 0 : index
    %c0_2 = arith.constant 0 : index
    %2 = vector.load %arg2[%c0_1, %c0_2] : memref<8x256xbf16, #tpu.memory_space<vmem>>, vector<8x256xbf16>
    %cst = arith.constant dense<0.000000e+00> : vector<16x256xf32>
    %3 = tpu.matmul %1, %2, %cst {dimension_numbers = #tpu.dot_dimension_numbers<[1], [0], [0], [1], [0, 0, 1, 1], [], []>} : vector<16x8xbf16>, vector<8x256xbf16>, vector<16x256xf32> -> vector<16x256xf32>
    %c0_3 = arith.constant 0 : index
    %c0_4 = arith.constant 0 : index
    %4 = vector.load %arg3[%c0_3, %c0_4] : memref<1x256xf32, #tpu.memory_space<vmem>>, vector<1x256xf32>
    %5 = vector.broadcast %4 : vector<1x256xf32> to vector<16x256xf32>
    %6 = arith.addf %3, %5 : vector<16x256xf32>
    %cst_5 = arith.constant 0.000000e+00 : f32
    %7 = vector.broadcast %cst_5 : f32 to vector<16x256xf32>
    %8 = arith.maximumf %6, %7 : vector<16x256xf32>
    %9 = arith.truncf %8 : vector<16x256xf32> to vector<16x256xbf16>
    %c0_6 = arith.constant 0 : index
    %c0_7 = arith.constant 0 : index
    %10 = vector.load %arg4[%c0_6, %c0_7] : memref<256x256xbf16, #tpu.memory_space<vmem>>, vector<256x256xbf16>
    %cst_8 = arith.constant dense<0.000000e+00> : vector<16x256xf32>
    %11 = tpu.matmul %9, %10, %cst_8 {dimension_numbers = #tpu.dot_dimension_numbers<[1], [0], [0], [1], [0, 0, 1, 1], [], []>} : vector<16x256xbf16>, vector<256x256xbf16>, vector<16x256xf32> -> vector<16x256xf32>
    %c0_9 = arith.constant 0 : index
    %c0_10 = arith.constant 0 : index
    %12 = vector.load %arg5[%c0_9, %c0_10] : memref<1x256xf32, #tpu.memory_space<vmem>>, vector<1x256xf32>
    %13 = vector.broadcast %12 : vector<1x256xf32> to vector<16x256xf32>
    %14 = arith.addf %11, %13 : vector<16x256xf32>
    %cst_11 = arith.constant 0.000000e+00 : f32
    %15 = vector.broadcast %cst_11 : f32 to vector<16x256xf32>
    %16 = arith.maximumf %14, %15 : vector<16x256xf32>
    %c0_12 = arith.constant 0 : index
    %c0_13 = arith.constant 0 : index
    %17 = vector.load %arg6[%c0_12, %c0_13] : memref<1x256xf32, #tpu.memory_space<vmem>>, vector<1x256xf32>
    %18 = vector.broadcast %17 : vector<1x256xf32> to vector<16x256xf32>
    %19 = arith.mulf %16, %18 : vector<16x256xf32>
    %cst_14 = arith.constant dense<0.000000e+00> : vector<16xf32>
    %20 = vector.multi_reduction <add>, %19, %cst_14 [1] : vector<16x256xf32> to vector<16xf32>
    %21 = vector.shape_cast %20 : vector<16xf32> to vector<16x1xf32>
    %c0_15 = arith.constant 0 : index
    %c0_16 = arith.constant 0 : index
    %22 = memref.load %arg7[%c0_15, %c0_16] : memref<1x1xf32, #tpu.memory_space<smem>>
    %23 = vector.broadcast %22 : f32 to vector<16x1xf32>
    %24 = arith.addf %21, %23 : vector<16x1xf32>
    %c0_17 = arith.constant 0 : index
    %c0_18 = arith.constant 0 : index
    %25 = vector.load %arg8[%c0_17, %c0_18] : memref<16x1xf32, #tpu.memory_space<vmem>>, vector<16x1xf32>
    tpu.vector_store %arg8[%c0_17, %c0_18], %24 {strides = array<i32>} : memref<16x1xf32, #tpu.memory_space<vmem>>, vector<16x1xf32>,
    return
  }
  func.func @transform_0(%arg0: i32) -> (i32, i32) {
    %c0_i32 = arith.constant 0 : i32
    %c0_i32_0 = arith.constant 0 : i32
    return %arg0, %c0_i32 : i32, i32
  }
  func.func @transform_1(%arg0: i32) -> (i32, i32) {
    %c0_i32 = arith.constant 0 : i32
    %c0_i32_0 = arith.constant 0 : i32
    %c0_i32_1 = arith.constant 0 : i32
    return %c0_i32, %c0_i32_0 : i32, i32
  }
  func.func @transform_2(%arg0: i32) -> (i32, i32) {
    %c0_i32 = arith.constant 0 : i32
    %c0_i32_0 = arith.constant 0 : i32
    %c0_i32_1 = arith.constant 0 : i32
    return %c0_i32, %c0_i32_0 : i32, i32
  }
  func.func @transform_3(%arg0: i32) -> (i32, i32) {
    %c0_i32 = arith.constant 0 : i32
    %c0_i32_0 = arith.constant 0 : i32
    %c0_i32_1 = arith.constant 0 : i32
    return %c0_i32, %c0_i32_0 : i32, i32
  }
  func.func @transform_4(%arg0: i32) -> (i32, i32) {
    %c0_i32 = arith.constant 0 : i32
    %c0_i32_0 = arith.constant 0 : i32
    %c0_i32_1 = arith.constant 0 : i32
    return %c0_i32, %c0_i32_0 : i32, i32
  }
  func.func @transform_5(%arg0: i32) -> (i32, i32) {
    %c0_i32 = arith.constant 0 : i32
    %c0_i32_0 = arith.constant 0 : i32
    %c0_i32_1 = arith.constant 0 : i32
    return %c0_i32, %c0_i32_0 : i32, i32
  }
  func.func @transform_6(%arg0: i32) -> (i32, i32) {
    %c0_i32 = arith.constant 0 : i32
    %c0_i32_0 = arith.constant 0 : i32
    %c0_i32_1 = arith.constant 0 : i32
    return %c0_i32, %c0_i32_0 : i32, i32
  }
  func.func @transform_7(%arg0: i32) -> (i32, i32) {
    %c0_i32 = arith.constant 0 : i32
    %c0_i32_0 = arith.constant 0 : i32
    return %arg0, %c0_i32 : i32, i32
  }
}

</mosaic_0001>

<bundles_post_ra>
// kernel: critic_forward.1
= control target key start
LH: loop header
LB: loop body
LE: loop exit
PB: predicated region body
PF: predicated region fallthrough
CT: control target
= control target key end

     0   :  { %vm53_vm0 = vcmask 1043456   ;;  %v516_v5 = vmov 0   ;;  %vm49_vm1 = vcmask 64512   ;;  %v34_v40 = vlaneseq  ;;  %s677_s0 = inlined_call_operand.vmem [shape: f32[8,8], index: 0, kind: input, shape index: {}]   ;;  %s678_s1 = inlined_call_operand.vmem [shape: bf16[8,256], index: 1, kind: input, shape index: {}]   ;;  %s679_s2 = inlined_call_operand.vmem [shape: f32[1,256], index: 2, kind: input, shape index: {}]   ;;  %s680_s3 = inlined_call_operand.vmem [shape: bf16[256,256], index: 3, kind: input, shape index: {}]   ;;  %s681_s4 = inlined_call_operand.vmem [shape: f32[1,256], index: 4, kind: input, shape index: {}]   ;;  %s682_s5 = inlined_call_operand.vmem [shape: f32[1,256], index: 5, kind: input, shape index: {}]   ;;  %s683_s6 = inlined_call_operand.<no memory space> [shape: f32[1,1], index: 6, kind: input, shape index: {}]   ;;  %s684_s7 = inlined_call_operand.vmem [shape: f32[8,1], index: 7, kind: output, shape index: {}]  }
   0x1   :  { %v31_v0 = vld [vmem:[%s678_s1] sm:$0xff]  ;;  %v29_v2 = vld [vmem:[%s677_s0 + $0x8] sm:$0xff]  ;;  %92 = vmatprep.mubr.bf16.mxu0 %v516_v5  ;;  %v471_v10 = vld [vmem:[%s680_s3 + $0x14] ss:$8 sps:$4 sm:$0xff]   ;;  %vm386_vm2 = vcmask 7168  }
   0x2   :  { %v28_v1 = vld [vmem:[%s677_s0] sm:$0xff]  ;;  %v430_v3 = vcombine.high %v31_v0, %v31_v0  ;;  %v429_v4 = vcombine.low %v31_v0, %v31_v0  ;;  %v473_v11 = vld [vmem:[%s680_s3 + $0x10] ss:$8 sps:$4 sm:$0xff]   ;;  %v477_v14 = vld [vmem:[%s680_s3 + $0x34] ss:$8 sps:$4 sm:$0xff]   ;;  %v35_v41 = vshrl.u32 %v34_v40, 7 }
   0x3   :  { %v468_v6 = vld [vmem:[%s680_s3 + $0x4] ss:$8 sps:$4 sm:$0xff]   ;;  %v470_v7 = vld [vmem:[%s680_s3] ss:$8 sps:$4 sm:$0xff]   ;;  %v30_v9 = vpack.c.bf16 %v29_v2, %v28_v1  ;;  %v479_v15 = vld [vmem:[%s680_s3 + $0x30] ss:$8 sps:$4 sm:$0xff]  }
   0x4   :  { %431 = vmatprep.subr.msk.bf16.mxu0 %vm53_vm0, %v430_v3  ;;  %v55_v8 = vsel %vm53_vm0, %v429_v4, 0  ;;  %313 = vmatprep.subr.bf16.mxu1 %v468_v6  ;;  %v474_v12 = vld [vmem:[%s680_s3 + $0x24] ss:$8 sps:$4 sm:$0xff]   ;;  %v476_v13 = vld [vmem:[%s680_s3 + $0x20] ss:$8 sps:$4 sm:$0xff]   ;;  %v36_v42 = vsub.s32 0, %v35_v41 }
   0x5   :  { %61 = vmatpush1.bf16.msra.mxu0 %v55_v8  ;;  %314 = vmatpush1.bf16.msra.mxu1 %v470_v7  ;;  %v480_v16 = vld [vmem:[%s680_s3 + $0x44] ss:$8 sps:$4 sm:$0xff]   ;;  %v482_v17 = vld [vmem:[%s680_s3 + $0x40] ss:$8 sps:$4 sm:$0xff]   ;;  %v483_v18 = vld [vmem:[%s680_s3 + $0x54] ss:$8 sps:$4 sm:$0xff]  }
   0x6   :  { %315 = vmatprep.subr.bf16.mxu1 %v471_v10  ;;  %v485_v19 = vld [vmem:[%s680_s3 + $0x50] ss:$8 sps:$4 sm:$0xff]   ;;  %v486_v20 = vld [vmem:[%s680_s3 + $0x64] ss:$8 sps:$4 sm:$0xff]   ;;  %v488_v21 = vld [vmem:[%s680_s3 + $0x60] ss:$8 sps:$4 sm:$0xff]  }
   0x7   :  { %v489_v22 = vld [vmem:[%s680_s3 + $0x74] ss:$8 sps:$4 sm:$0xff]   ;;  %v491_v23 = vld [vmem:[%s680_s3 + $0x70] ss:$8 sps:$4 sm:$0xff]   ;;  %v492_v24 = vld [vmem:[%s680_s3 + $0x84] ss:$8 sps:$4 sm:$0xff]  }
   0x8   :  { %432 = vmatmul.mubr.msk.bf16.vlgmr.msra.gmra.mrb[0].mxu0 %vm49_vm1, %v30_v9  ;;  %v494_v25 = vld [vmem:[%s680_s3 + $0x80] ss:$8 sps:$4 sm:$0xff]   ;;  %v495_v26 = vld [vmem:[%s680_s3 + $0x94] ss:$8 sps:$4 sm:$0xff]   ;;  %v497_v27 = vld [vmem:[%s680_s3 + $0x90] ss:$8 sps:$4 sm:$0xff]  }
   0x9   :  { %316 = vmatpush1.bf16.msra.mxu1 %v473_v11  ;;  %v498_v28 = vld [vmem:[%s680_s3 + $0xa4] ss:$8 sps:$4 sm:$0xff]   ;;  %v500_v29 = vld [vmem:[%s680_s3 + $0xa0] ss:$8 sps:$4 sm:$0xff]   ;;  %v501_v30 = vld [vmem:[%s680_s3 + $0xb4] ss:$8 sps:$4 sm:$0xff]  }
   0xa   :  { %317 = vmatprep.subr.bf16.mxu1 %v474_v12  ;;  %v503_v31 = vld [vmem:[%s680_s3 + $0xb0] ss:$8 sps:$4 sm:$0xff]   ;;  %v504_v32 = vld [vmem:[%s680_s3 + $0xc4] ss:$8 sps:$4 sm:$0xff]   ;;  %v506_v33 = vld [vmem:[%s680_s3 + $0xc0] ss:$8 sps:$4 sm:$0xff]  }
   0xb   :  { %v507_v34 = vld [vmem:[%s680_s3 + $0xd4] ss:$8 sps:$4 sm:$0xff]   ;;  %v509_v35 = vld [vmem:[%s680_s3 + $0xd0] ss:$8 sps:$4 sm:$0xff]   ;;  %v510_v36 = vld [vmem:[%s680_s3 + $0xe4] ss:$8 sps:$4 sm:$0xff]  }
   0xc   :  { %v512_v37 = vld [vmem:[%s680_s3 + $0xe0] ss:$8 sps:$4 sm:$0xff]   ;;  %v513_v38 = vld [vmem:[%s680_s3 + $0xf4] ss:$8 sps:$4 sm:$0xff]   ;;  %v515_v39 = vld [vmem:[%s680_s3 + $0xf0] ss:$8 sps:$4 sm:$0xff]  }
   0xd   :  { %318 = vmatpush1.bf16.msra.mxu1 %v476_v13  ;;  %v32_v43 = vld [vmem:[%s679_s2] sm:$0x3]  ;;  %v40_v44 = vsub.s32 1, %v35_v41 }
   0xe   :  { %319 = vmatprep.subr.bf16.mxu1 %v477_v14  ;;  %v37_v45 = vrot.slane %v32_v43, %v36_v42  ;;  %v141_v61 = vld [vmem:[%s681_s4] sm:$0x3] }
   0xf   :  { %v41_v46 = vrot.slane %v32_v43, %v40_v44  ;;  %v146_v62 = vrot.slane %v141_v61, %v36_v42  ;;  %v150_v63 = vrot.slane %v141_v61, %v40_v44  ;;  %v360_v0 = vld [vmem:[%s682_s5] sm:$0x3] }
  0x10   :  { %v365_v4 = vrot.slane %v360_v0, %v36_v42  ;;  %v369_v7 = vrot.slane %v360_v0, %v40_v44 }
  0x11   :  { %320 = vmatpush1.bf16.msra.mxu1 %v479_v15 }
  0x12   :  { %321 = vmatprep.subr.bf16.mxu1 %v480_v16 }
  0x15   :  { %322 = vmatpush1.bf16.msra.mxu1 %v482_v17 }
  0x16   :  { %323 = vmatprep.subr.bf16.mxu1 %v483_v18 }
  0x19   :  { %324 = vmatpush1.bf16.msra.mxu1 %v485_v19 }
  0x1a   :  { %325 = vmatprep.subr.bf16.mxu1 %v486_v20 }
  0x1d   :  { %326 = vmatpush1.bf16.msra.mxu1 %v488_v21  ;;  %v383_v21 = vstv %s683_s6 }
  0x1e   :  { %327 = vmatprep.subr.bf16.mxu1 %v489_v22 }
  0x21   :  { %328 = vmatpush1.bf16.msra.mxu1 %v491_v23 }
  0x22   :  { %329 = vmatprep.subr.bf16.mxu1 %v492_v24 }
  0x25   :  { %330 = vmatpush1.bf16.msra.mxu1 %v494_v25 }
  0x26   :  { %331 = vmatprep.subr.bf16.mxu1 %v495_v26 }
  0x29   :  { %332 = vmatpush1.bf16.msra.mxu1 %v497_v27 }
  0x2a   :  { %333 = vmatprep.subr.bf16.mxu1 %v498_v28 }
  0x2d   :  { %334 = vmatpush1.bf16.msra.mxu1 %v500_v29 }
  0x2e   :  { %335 = vmatprep.subr.bf16.mxu1 %v501_v30 }
  0x31   :  { %336 = vmatpush1.bf16.msra.mxu1 %v503_v31 }
  0x32   :  { %337 = vmatprep.subr.bf16.mxu1 %v504_v32 }
  0x35   :  { %338 = vmatpush1.bf16.msra.mxu1 %v506_v33 }
  0x36   :  { %339 = vmatprep.subr.bf16.mxu1 %v507_v34 }
  0x39   :  { %340 = vmatpush1.bf16.msra.mxu1 %v509_v35 }
  0x3a   :  { %341 = vmatprep.subr.bf16.mxu1 %v510_v36 }
  0x3d   :  { %342 = vmatpush1.bf16.msra.mxu1 %v512_v37 }
  0x3e   :  { %343 = vmatprep.subr.bf16.mxu1 %v513_v38 }
  0x41   :  { %344 = vmatpush1.bf16.msra.mxu1 %v515_v39 }
  0xdb   :  { %v94_v47 = vpop.f32.mrb[0].mxu0 }
  0xdc   :  { %v95_v48 = vadd.f32 %v94_v47, %v37_v45  ;;  %v96_v49 = vpop.f32.mrb[1].mxu0 }
  0xdd   :  { %v97_v50 = vadd.f32 %v96_v49, %v41_v46  ;;  %v98_v51 = vpop.f32.mrb[2].mxu0 }
  0xde   :  { %v99_v52 = vadd.f32 %v98_v51, %v37_v45  ;;  %v100_v53 = vpop.f32.mrb[3].mxu0  ;;  %v103_v55 = vmax.f32 %v95_v48, 0.0 }
  0xdf   :  { %v101_v54 = vadd.f32 %v100_v53, %v41_v46  ;;  %v104_v57 = vmax.f32 %v97_v50, 0.0 }
  0xe0   :  { %v105_v56 = vmax.f32 %v99_v52, 0.0 }
  0xe1   :  { %v106_v58 = vmax.f32 %v101_v54, 0.0 }
  0xe2   :  { %v107_v59 = vpack.c.bf16 %v105_v56, %v103_v55 }
  0xe3   :  { %v108_v60 = vpack.c.bf16 %v106_v58, %v104_v57 }
  0xe5   :  { %345 = vmatprep.mubr.bf16.mxu1 %v108_v60 }
  0xe6   :  { %346 = vmatmul.mubr.bf16.vlgmr.msra.gmra.mrb[0].mxu1 %v107_v59 }
 0x1b9   :  { %v347_v1 = vpop.f32.mrb[0].mxu1 }
 0x1ba   :  { %v348_v2 = vadd.f32 %v347_v1, %v146_v62  ;;  %v349_v3 = vpop.f32.mrb[1].mxu1 }
 0x1bb   :  { %v350_v5 = vadd.f32 %v349_v3, %v150_v63  ;;  %v351_v6 = vpop.f32.mrb[2].mxu1 }
 0x1bc   :  { %v356_v8 = vmax.f32 %v348_v2, 0.0  ;;  %v352_v9 = vadd.f32 %v351_v6, %v146_v62  ;;  %v353_v10 = vpop.f32.mrb[3].mxu1 }
 0x1bd   :  { %v357_v11 = vmax.f32 %v350_v5, 0.0  ;;  %v354_v12 = vadd.f32 %v353_v10, %v150_v63 }
 0x1be   :  { %v358_v13 = vmax.f32 %v352_v9, 0.0  ;;  %v372_v14 = vmul.f32 %v365_v4, %v356_v8 }
 0x1bf   :  { %v359_v15 = vmax.f32 %v354_v12, 0.0  ;;  %v373_v16 = vmul.f32 %v369_v7, %v357_v11 }
 0x1c0   :  { %v374_v17 = vmul.f32 %v365_v4, %v358_v13 }
 0x1c1   :  { %v375_v18 = vmul.f32 %v369_v7, %v359_v15  ;;  %v376_v19 = vadd.f32 %v373_v16, %v372_v14 }
 0x1c3   :  { %377 = vadd.xlane.f32.xlu0 %v376_v19  ;;  %v379_v20 = vadd.f32 %v375_v18, %v374_v17 }
 0x1c7   :  { %380 = vadd.xlane.f32.xlu0 %v379_v20 }
 0x250   :  { %v378_v22 = vpop.xlane.xlu0 %377 }
 0x251   :  { %v384_v23 = vadd.f32 %v383_v21, %v378_v22 }
 0x253   :  { %387 = vst.msk [vmem:[#allocation3] sm:$0xff] %vm386_vm2, %v384_v23 }
 0x254   :  { %v381_v24 = vpop.xlane.xlu0 %380 }
 0x25a   :  { %v418_v25 = vld [vmem:[#allocation3] sm:$0xff] }
 0x25b   :  { %419 = vst [vmem:[%s684_s7] sm:$0xff] %v418_v25 }

</bundles_post_ra>
